<compile_context>
chip_gen: v5e
topology: v5e:2x2
jax: 0.10.0
libtpu: 0.0.40
codegen_flags: <defaults>
</compile_context>

<pallas_src>
import functools

import jax
import jax.numpy as jnp
from jax import lax
from jax.experimental import pallas as pl
from jax.experimental.pallas import tpu as pltpu

EPS = 1e-5  # nn.InstanceNorm2d default eps (affine=False by default)


def _ru(v, m):
    return (v + m - 1) // m * m


def _sublane(dtype):
    # sublane packing granularity: 8 for 32-bit, 16 for 16-bit types
    return max(8, 32 // jnp.dtype(dtype).itemsize)


def _vmem_budget_bytes():
    """<= 3/4 of physical VMEM: ~96 MiB on v5e/v6e (128 MiB), ~48 MiB on v7x (64 MiB)."""
    cap = 64 << 20
    try:
        info = pltpu.get_tpu_info()
        cap = int(getattr(info, "vmem_capacity_bytes", cap))
    except Exception:
        pass
    return max((cap * 3) // 4, 32 << 20)


def _activation(y, leaky):
    if leaky is None:
        return jnp.maximum(y, 0.0)
    return jnp.where(y > 0.0, y, leaky * y)


# --------------------------------------------------------------------------------------
# Fused single-pass kernel: conv (one K=9C matmul) + instance-norm + activation per sample.
# All blocks cover their full trailing dims -> no dynamic indexing, dense lane stores.
# --------------------------------------------------------------------------------------
def _make_fused_kernel(total_px, use_bn, leaky):
    inv_count = 1.0 / float(total_px)

    def kernel(p_ref, w_ref, b_ref, o_ref):
        # p_ref: (1, 9C, P) compute_dtype   w_ref: (O, 9C)   b_ref: (O, 1) f32
        # o_ref: (1, O, P) f32  (spatial axis lane-dense; reshapes to NCHW for free)
        conv = jnp.dot(w_ref[...], p_ref[0],
                       preferred_element_type=jnp.float32) + b_ref[...]      # (O, P) f32
        if use_bn:
            # NOTE: E[x^2] - E[x]^2 in f32; fine for conv outputs with |mean| ~ std.
            mean = jnp.sum(conv, axis=1, keepdims=True) * inv_count          # (O, 1)
            ex2 = jnp.sum(conv * conv, axis=1, keepdims=True) * inv_count
            var = jnp.maximum(ex2 - mean * mean, 0.0)
            scale = lax.rsqrt(var + EPS)                                     # EUP
            y = (conv - mean) * scale
        else:
            y = conv
        o_ref[0] = _activation(y, leaky)

    return kernel


# --------------------------------------------------------------------------------------
# Two-pass fallback (per-sample working set too big for VMEM):
#   pass 1: conv tile + per-channel sum / sum-of-squares (resident accumulator over T)
#   pass 2: normalize + activation, streaming over the same tiles.
# Intermediate conv is stored in compute_dtype (bf16 by default -> half the HBM traffic).
# --------------------------------------------------------------------------------------
def _conv_stats_kernel(p_ref, w_ref, b_ref, conv_ref, sum_ref, sq_ref):
    t = pl.program_id(1)
    conv = jnp.dot(w_ref[...], p_ref[0, 0],
                   preferred_element_type=jnp.float32) + b_ref[...]          # (O, TP) f32
    conv_ref[0, 0] = conv.astype(conv_ref.dtype)

    s = jnp.sum(conv, axis=1, keepdims=True)                                 # (O, 1)
    sq = jnp.sum(conv * conv, axis=1, keepdims=True)

    @pl.when(t == 0)
    def _():
        sum_ref[0] = s
        sq_ref[0] = sq

    @pl.when(t > 0)
    def _():
        sum_ref[0] = sum_ref[0] + s
        sq_ref[0] = sq_ref[0] + sq


def _make_norm_kernel(total_px, use_bn, leaky):
    inv_count = 1.0 / float(total_px)

    def kernel(conv_ref, sum_ref, sq_ref, o_ref):
        y = conv_ref[0, 0].astype(jnp.float32)                               # (O, TP)
        if use_bn:
            mean = sum_ref[0] * inv_count
            ex2 = sq_ref[0] * inv_count
            var = jnp.maximum(ex2 - mean * mean, 0.0)
            scale = lax.rsqrt(var + EPS)
            y = (y - mean) * scale
        o_ref[0, 0] = _activation(y, leaky)

    return kernel


def contracting_block(x, weight, bias, *, use_bn=True, activation="relu",
                      compute_dtype=jnp.bfloat16, fused=None, row_tile=None):
    """
    x:      (N, C, H, W)   float32 (NCHW, like PyTorch)
    weight: (2C, C, 3, 3)  float32 (PyTorch Conv2d OIHW layout)
    bias:   (2C,)          float32
    returns (N, 2C, ceil(H/2), ceil(W/2)) float32
    """
    N, C, H, W = x.shape
    O = weight.shape[0]
    assert weight.shape == (O, C, 3, 3), weight.shape
    assert activation in ("relu", "lrelu")
    leaky = None if activation == "relu" else 0.2

    H_out, W_out = (H + 1) // 2, (W + 1) // 2
    P = H_out * W_out
    KC = 9 * C
    itm = jnp.dtype(compute_dtype).itemsize
    sub_c = _sublane(compute_dtype)
    budget = _vmem_budget_bytes()

    # ---------------- host-side prep: im2col with K = 9C (one fused matmul) ----------------
    xpad = jnp.pad(x, ((0, 0), (0, 0), (1, 1), (1, 1)), mode="reflect")      # (N, C, H+2, W+2)
    taps = []
    for kh in range(3):
        for kw in range(3):
            taps.append(xpad[:, :, kh:kh + 2 * H_out:2, kw:kw + 2 * W_out:2])  # (N, C, Ho, Wo)
    patches = jnp.stack(taps, axis=1).reshape(N, KC, H_out, W_out)           # kc = tap*C + c
    patches = patches.astype(compute_dtype)

    # weight (O, C, kh, kw) -> (O, kh, kw, C) -> (O, 9C) so kc ordering matches patches
    w_flat = jnp.transpose(weight, (0, 2, 3, 1)).reshape(O, KC).astype(compute_dtype)
    b_col = bias.reshape(O, 1).astype(jnp.float32)

    # ---------------- per-generation VMEM budgeting ----------------
    p_pad = _ru(P, 128)
    patches_blk = _ru(KC, sub_c) * p_pad * itm
    out_blk = _ru(O, 8) * p_pad * 4
    w_blk = _ru(O, sub_c) * _ru(KC, 128) * itm
    fused_need = 2 * patches_blk + 3 * out_blk + 2 * w_blk + (2 << 20)

    if fused is None:
        fused = fused_need <= budget
    if fused and fused_need > budget:
        raise ValueError("fused=True requested but per-sample working set exceeds VMEM budget")

    vmem_limit = int(min(budget, 112 << 20))

    if fused:
        # ------------------ fused single pass: grid = (N,) ------------------
        patches_f = patches.reshape(N, KC, P)
        y = pl.pallas_call(
            _make_fused_kernel(P, use_bn, leaky),
            out_shape=jax.ShapeDtypeStruct((N, O, P), jnp.float32),
            grid_spec=pltpu.PrefetchScalarGridSpec(
                num_scalar_prefetch=0,
                grid=(N,),
                in_specs=[
                    pl.BlockSpec((1, KC, P), lambda n: (n, 0, 0)),
                    pl.BlockSpec((O, KC), lambda n: (0, 0)),
                    pl.BlockSpec((O, 1), lambda n: (0, 0)),
                ],
                out_specs=pl.BlockSpec((1, O, P), lambda n: (n, 0, 0)),
            ),
            compiler_params=pltpu.CompilerParams(
                dimension_semantics=("parallel",),   # N across cores (v7x megacore)
                vmem_limit_bytes=vmem_limit),
        )(patches_f, w_flat, b_col)
        # (N, O, P) -> NCHW is a pure-metadata reshape: no epilogue HBM traffic.
        return y.reshape(N, O, H_out, W_out)

    # ------------------ two-pass fallback: grid = (N, T) ------------------
    inter_dtype = compute_dtype
    inter_itm = jnp.dtype(inter_dtype).itemsize

    per_px = 2 * _ru(KC, sub_c) * itm + 2 * _ru(O, 8) * (inter_itm + 4) + 16
    max_px = max((budget - 2 * w_blk - (4 << 20)) // per_px, W_out)
    max_px = int(min(max_px, 1 << 14))

    if row_tile is not None:
        TH = int(row_tile)
        assert H_out % TH == 0, (H_out, TH)
    else:
        TH = 1
        for th in range(1, H_out + 1):
            if H_out % th == 0 and th * W_out <= max_px:
                TH = th
    T = H_out // TH
    TP = TH * W_out

    patches_t = patches.reshape(N, KC, T, TP).transpose(0, 2, 1, 3)          # (N, T, 9C, TP)

    conv_flat, ch_sum, ch_sq = pl.pallas_call(
        _conv_stats_kernel,
        out_shape=(jax.ShapeDtypeStruct((N, T, O, TP), inter_dtype),
                   jax.ShapeDtypeStruct((N, O, 1), jnp.float32),
                   jax.ShapeDtypeStruct((N, O, 1), jnp.float32)),
        grid_spec=pltpu.PrefetchScalarGridSpec(
            num_scalar_prefetch=0,
            grid=(N, T),
            in_specs=[
                pl.BlockSpec((1, 1, KC, TP), lambda n, t: (n, t, 0, 0)),
                pl.BlockSpec((O, KC), lambda n, t: (0, 0)),
                pl.BlockSpec((O, 1), lambda n, t: (0, 0)),
            ],
            out_specs=[
                pl.BlockSpec((1, 1, O, TP), lambda n, t: (n, t, 0, 0)),
                pl.BlockSpec((1, O, 1), lambda n, t: (n, 0, 0)),   # resident sum over t
                pl.BlockSpec((1, O, 1), lambda n, t: (n, 0, 0)),   # resident sumsq over t
            ],
        ),
        compiler_params=pltpu.CompilerParams(
            dimension_semantics=("parallel", "arbitrary"),
            vmem_limit_bytes=vmem_limit),
    )(patches_t, w_flat, b_col)

    y = pl.pallas_call(
        _make_norm_kernel(P, use_bn, leaky),
        out_shape=jax.ShapeDtypeStruct((N, T, O, TP), jnp.float32),
        grid_spec=pltpu.PrefetchScalarGridSpec(
            num_scalar_prefetch=0,
            grid=(N, T),
            in_specs=[
                pl.BlockSpec((1, 1, O, TP), lambda n, t: (n, t, 0, 0)),
                pl.BlockSpec((1, O, 1), lambda n, t: (n, 0, 0)),
                pl.BlockSpec((1, O, 1), lambda n, t: (n, 0, 0)),
            ],
            out_specs=pl.BlockSpec((1, 1, O, TP), lambda n, t: (n, t, 0, 0)),
        ),
        compiler_params=pltpu.CompilerParams(
            dimension_semantics=("parallel", "parallel"),
            vmem_limit_bytes=vmem_limit),
    )(conv_flat, ch_sum, ch_sq)

    # TODO(synk): when TP % 128 == 0 pass 2 could write (N, O, P) directly (no transpose);
    # this is the rare huge-image fallback path so the host transpose is kept for simplicity.
    y = y.reshape(N, T, O, TH, W_out).transpose(0, 2, 1, 3, 4)
    return y.reshape(N, O, H_out, W_out)


def _reference(x, weight, bias):
    """Pure-JAX reference: reflect-pad conv stride 2 + instance norm + relu."""
    xpad = jnp.pad(x, ((0, 0), (0, 0), (1, 1), (1, 1)), mode="reflect")
    conv = lax.conv_general_dilated(
        xpad, weight, window_strides=(2, 2), padding="VALID",
        dimension_numbers=("NCHW", "OIHW", "NCHW"))
    conv = conv + bias.reshape(1, -1, 1, 1)
    mean = jnp.mean(conv, axis=(2, 3), keepdims=True)
    var = jnp.mean((conv - mean) ** 2, axis=(2, 3), keepdims=True)
    normed = (conv - mean) * lax.rsqrt(var + EPS)
    return jnp.maximum(normed, 0.0)


if __name__ == "__main__":
    key = jax.random.PRNGKey(0)
    k_x, k_w, k_b = jax.random.split(key, 3)

    N, C, H, W = 2, 4, 16, 16
    O = 2 * C

    x = jax.random.normal(k_x, (N, C, H, W), dtype=jnp.float32)
    fan_in = C * 3 * 3
    bound = 1.0 / (fan_in ** 0.5)
    weight = jax.random.uniform(k_w, (O, C, 3, 3), minval=-bound, maxval=bound,
                                dtype=jnp.float32)
    bias = jax.random.uniform(k_b, (O,), minval=-bound, maxval=bound,
                              dtype=jnp.float32)

    y_ref = _reference(x, weight, bias)

    # 1) fused single-pass, f32 MXU inputs -> tight tolerance.
    f32_fused = jax.jit(functools.partial(contracting_block, compute_dtype=jnp.float32))
    y1 = jax.block_until_ready(f32_fused(x, weight, bias))
    assert y1.shape == (N, O, H // 2, W // 2), y1.shape
    assert jnp.allclose(y1, y_ref, atol=2e-4, rtol=2e-4), \
        float(jnp.max(jnp.abs(y1 - y_ref)))

    # 2) two-pass fallback (exercises cross-tile stats accumulation), f32, tight tolerance.
    f32_split = jax.jit(functools.partial(contracting_block, compute_dtype=jnp.float32,
                                          fused=False, row_tile=2))
    y2 = jax.block_until_ready(f32_split(x, weight, bias))
    assert jnp.allclose(y2, y_ref, atol=2e-4, rtol=2e-4), \
        float(jnp.max(jnp.abs(y2 - y_ref)))

    # 3) default bf16 MXU inputs (fast path on v5e/v6e/v7x), f32 accumulation/epilogue.
    bf16_fused = jax.jit(contracting_block)
    y3 = jax.block_until_ready(bf16_fused(x, weight, bias))
    assert jnp.allclose(y3, y_ref, atol=1e-1, rtol=5e-2), \
        float(jnp.max(jnp.abs(y3 - y_ref)))

    # 4) bf16 two-pass fallback (bf16 conv intermediate halves intermediate HBM traffic).
    bf16_split = jax.jit(functools.partial(contracting_block, fused=False, row_tile=4))
    y4 = jax.block_until_ready(bf16_split(x, weight, bias))
    assert jnp.allclose(y4, y_ref, atol=1e-1, rtol=5e-2), \
        float(jnp.max(jnp.abs(y4 - y_ref)))

    print("KERNEL_OK")
</pallas_src>

<mosaic_0001>
module attributes {stable_mosaic.version = 11 : i64} {
  func.func @kernel(%arg0: i32, %arg1: memref<1x36x64xf32, #tpu.memory_space<vmem>>, %arg2: memref<8x36xf32, #tpu.memory_space<vmem>>, %arg3: memref<8x1xf32, #tpu.memory_space<vmem>>, %arg4: memref<1x8x64xf32, #tpu.memory_space<vmem>>) attributes {dimension_semantics = [#tpu.dimension_semantics<parallel>], iteration_bounds = array<i64: 2>, scalar_prefetch = 0 : i64, scratch_operands = 0 : i64, tpu.core_type = #tpu.core_type<tc>, window_params = [{transform_indices = @transform_0, window_bounds = array<i64: 1, 36, 64>}, {pipeline_mode = #tpu.pipeline_mode<synchronous>, transform_indices = @transform_1, window_bounds = array<i64: 8, 36>}, {pipeline_mode = #tpu.pipeline_mode<synchronous>, transform_indices = @transform_2, window_bounds = array<i64: 8, 1>}, {transform_indices = @transform_3, window_bounds = array<i64: 1, 8, 64>}]} {
    %c0 = arith.constant 0 : index
    %c0_0 = arith.constant 0 : index
    %0 = vector.load %arg2[%c0, %c0_0] : memref<8x36xf32, #tpu.memory_space<vmem>>, vector<8x36xf32>
    %c0_1 = arith.constant 0 : index
    %c0_2 = arith.constant 0 : index
    %c0_3 = arith.constant 0 : index
    %1 = vector.load %arg1[%c0_1, %c0_2, %c0_3] : memref<1x36x64xf32, #tpu.memory_space<vmem>>, vector<1x36x64xf32>
    %2 = vector.shape_cast %1 : vector<1x36x64xf32> to vector<36x64xf32>
    %cst = arith.constant dense<0.000000e+00> : vector<8x64xf32>
    %3 = tpu.matmul %0, %2, %cst {dimension_numbers = #tpu.dot_dimension_numbers<[1], [0], [0], [1], [0, 0, 1, 1], [], []>} : vector<8x36xf32>, vector<36x64xf32>, vector<8x64xf32> -> vector<8x64xf32>
    %c0_4 = arith.constant 0 : index
    %c0_5 = arith.constant 0 : index
    %4 = vector.load %arg3[%c0_4, %c0_5] : memref<8x1xf32, #tpu.memory_space<vmem>>, vector<8x1xf32>
    %5 = vector.broadcast %4 : vector<8x1xf32> to vector<8x64xf32>
    %6 = arith.addf %3, %5 : vector<8x64xf32>
    %cst_6 = arith.constant dense<0.000000e+00> : vector<8xf32>
    %7 = vector.multi_reduction <add>, %6, %cst_6 [1] : vector<8x64xf32> to vector<8xf32>
    %8 = vector.shape_cast %7 : vector<8xf32> to vector<8x1xf32>
    %cst_7 = arith.constant 1.562500e-02 : f32
    %9 = vector.broadcast %cst_7 : f32 to vector<8x1xf32>
    %10 = arith.mulf %8, %9 : vector<8x1xf32>
    %11 = arith.mulf %6, %6 : vector<8x64xf32>
    %cst_8 = arith.constant dense<0.000000e+00> : vector<8xf32>
    %12 = vector.multi_reduction <add>, %11, %cst_8 [1] : vector<8x64xf32> to vector<8xf32>
    %13 = vector.shape_cast %12 : vector<8xf32> to vector<8x1xf32>
    %cst_9 = arith.constant 1.562500e-02 : f32
    %14 = vector.broadcast %cst_9 : f32 to vector<8x1xf32>
    %15 = arith.mulf %13, %14 : vector<8x1xf32>
    %16 = arith.mulf %10, %10 : vector<8x1xf32>
    %17 = arith.subf %15, %16 : vector<8x1xf32>
    %cst_10 = arith.constant 0.000000e+00 : f32
    %18 = vector.broadcast %cst_10 : f32 to vector<8x1xf32>
    %19 = arith.maximumf %17, %18 : vector<8x1xf32>
    %cst_11 = arith.constant 9.99999974E-6 : f32
    %20 = vector.broadcast %cst_11 : f32 to vector<8x1xf32>
    %21 = arith.addf %19, %20 : vector<8x1xf32>
    %22 = math.rsqrt %21 : vector<8x1xf32>
    %23 = vector.broadcast %10 : vector<8x1xf32> to vector<8x64xf32>
    %24 = arith.subf %6, %23 : vector<8x64xf32>
    %25 = vector.broadcast %22 : vector<8x1xf32> to vector<8x64xf32>
    %26 = arith.mulf %24, %25 : vector<8x64xf32>
    %cst_12 = arith.constant 0.000000e+00 : f32
    %27 = vector.broadcast %cst_12 : f32 to vector<8x64xf32>
    %28 = arith.maximumf %26, %27 : vector<8x64xf32>
    %c0_13 = arith.constant 0 : index
    %c0_14 = arith.constant 0 : index
    %c0_15 = arith.constant 0 : index
    %29 = vector.load %arg4[%c0_13, %c0_14, %c0_15] : memref<1x8x64xf32, #tpu.memory_space<vmem>>, vector<1x8x64xf32>
    %30 = vector.shape_cast %29 : vector<1x8x64xf32> to vector<8x64xf32>
    %31 = vector.shape_cast %28 : vector<8x64xf32> to vector<1x8x64xf32>
    tpu.vector_store %arg4[%c0_13, %c0_14, %c0_15], %31 {strides = array<i32>} : memref<1x8x64xf32, #tpu.memory_space<vmem>>, vector<1x8x64xf32>,
    return
  }
  func.func @transform_0(%arg0: i32) -> (i32, i32, i32) {
    %c0_i32 = arith.constant 0 : i32
    %c0_i32_0 = arith.constant 0 : i32
    %c0_i32_1 = arith.constant 0 : i32
    return %arg0, %c0_i32, %c0_i32_0 : i32, i32, i32
  }
  func.func @transform_1(%arg0: i32) -> (i32, i32) {
    %c0_i32 = arith.constant 0 : i32
    %c0_i32_0 = arith.constant 0 : i32
    %c0_i32_1 = arith.constant 0 : i32
    return %c0_i32, %c0_i32_0 : i32, i32
  }
  func.func @transform_2(%arg0: i32) -> (i32, i32) {
    %c0_i32 = arith.constant 0 : i32
    %c0_i32_0 = arith.constant 0 : i32
    %c0_i32_1 = arith.constant 0 : i32
    return %c0_i32, %c0_i32_0 : i32, i32
  }
  func.func @transform_3(%arg0: i32) -> (i32, i32, i32) {
    %c0_i32 = arith.constant 0 : i32
    %c0_i32_0 = arith.constant 0 : i32
    %c0_i32_1 = arith.constant 0 : i32
    return %arg0, %c0_i32, %c0_i32_0 : i32, i32, i32
  }
}

</mosaic_0001>

<bundles_post_ra>
// kernel: contracting_block.1
= control target key start
LH: loop header
LB: loop body
LE: loop exit
PB: predicated region body
PF: predicated region fallthrough
CT: control target
= control target key end

     0   :  { %s343_s12 = smov 0   ;;  %s373_s0 = inlined_call_operand.vmem [shape: f32[2,36,64], index: 0, kind: input, shape index: {}]   ;;  %s374_s1 = inlined_call_operand.vmem [shape: f32[8,36], index: 1, kind: input, shape index: {}]   ;;  %s375_s2 = inlined_call_operand.vmem [shape: f32[8,1], index: 2, kind: input, shape index: {}]   ;;  %s376_s3 = inlined_call_operand.vmem [shape: f32[2,8,64], index: 3, kind: output, shape index: {}]  }
   0x1 LB: > { %s290_s13 = sadd.s32 4294967295, %s320_s12   ;;  %p294_p0 = scmp.ge.s32.totalorder %s320_s12, 1  ;;  %s320_s12 = sphi %s343_s12, %s13_s12  }
   0x2   : > { %p137_p1 = scmp.lt.s32.totalorder %s320_s12, 3 }
   0x4   : > { %p138_p2 = pnand %p294_p0, %p137_p1 }
   0x5   : > { %p160_p3 = scmp.lt.s32.totalorder (!%p138_p2), %s290_s13, 1 }
   0x6   : > { %141 = sbr.rel (%p138_p2) target bundleno = 303 (0x12f), region = 32 }
   0xb   : > { %v175_v0 = vld [vmem:[%s375_s2] sm:$0xff]  ;;  %v322_v1 = vmov 0   ;;  %s378_s13 = smov (!%p160_p3, %s290_s13), 1  ;;  %vm185_vm0 = vcmask 1043456   ;;  %vm181_vm1 = vcmask 293888   ;;  %vm209_vm2 = vcmask 523264  }
   0xc   : > { %311 = vset.pattern.permute.xlu0 %v322_v1  ;;  %s301_s16 = smul.u32 40, %s378_s13  ;;  %v169_v7 = vld [vmem:[%s374_s1] sm:$0xff]  ;;  %s296_s22 = sshll.u32 %s378_s13, 3 }
   0xd   : > { %178 = vperm.xlu0 %311, %v175_v0   ;;  %s168_s25 = scalar_lea.vmem %s376_s3, %s296_s22 }
   0xe   : > { %s164_s19 = scalar_lea.vmem %s373_s0, %s301_s16 }
   0xf   : > { %v174_v2 = vld [vmem:[%s164_s19 + $0x20] sm:$0xf]  ;;  %v173_v3 = vld [vmem:[%s164_s19 + $0x18] sm:$0xff]  ;;  %v172_v4 = vld [vmem:[%s164_s19 + $0x10] sm:$0xff] }
  0x10   : > { %297 = vmatpush.msk.msra.mxu0 %vm185_vm0, %v174_v2  ;;  %v171_v5 = vld [vmem:[%s164_s19 + $0x8] sm:$0xff]  ;;  %v170_v6 = vld [vmem:[%s164_s19] sm:$0xff] }
  0x12   : > { %201 = vmatpush.msra.mxu0 %v173_v3 }
  0x14   : > { %202 = vmatpush.msra.mxu0 %v172_v4 }
  0x16   : > { %203 = vmatpush.msra.mxu0 %v171_v5 }
  0x18   : > { %204 = vmatpush.msra.mxu0 %v170_v6 }
  0x19   : > { %298 = vmatmul.msk.f32.vlgmr.msra.gmra.mxu0 %vm181_vm1, %v169_v7 }
  0x7f   : > { %v179_v8 = vpop.permute.xlu0 %178 }
  0x96   : > { %v206_v9 = vpop.f32.mrf.mxu0 }
  0x97   : > { %v207_v10 = vadd.f32 %v206_v9, %v179_v8 }
  0x99   : > { %v210_v11 = vsel %vm209_vm2, %v207_v10, 0.0  ;;  %v214_v12 = vmul.f32 %v207_v10, %v207_v10 }
  0x9a   : > { %211 = vadd.xlane.f32.xlu0 %v210_v11 }
  0x9b   : > { %v215_v13 = vsel %vm209_vm2, %v214_v12, 0.0 }
  0x9c   : > { %216 = vadd.xlane.f32.xlu1 %v215_v13 }
 0x10d   : > { %v212_v14 = vpop.xlane.xlu0 %211 }
 0x10e   : > { %v213_v15 = vmul.f32 0.015625, %v212_v14 }
 0x10f   : > { %v217_v16 = vpop.xlane.xlu1 %216 }
 0x110   : > { %v219_v17 = vmul.f32 %v213_v15, %v213_v15  ;;  %v218_v18 = vmul.f32 0.015625, %v217_v16  ;;  %v233_v28 = vsub.f32 %v207_v10, %v213_v15 }
 0x112   : > { %v220_v19 = vsub.f32 %v218_v18, %v219_v17 }
 0x114   : > { %v221_v20 = vmax.f32 %v220_v19, 0.0 }
 0x116   : > { %v222_v21 = vadd.f32 1e-05, %v221_v20 }
 0x118   : > { %312 = vrsqrt.f32 %v222_v21  ;;  %vm229_vm4 = vweird.f32 %v222_v21 }
 0x11e   : > { %v313_v22 = vpop.eup %312 }
 0x11f   : > { %v224_v23 = vmul.f32 %v313_v22, %v222_v21  ;;  %vm230_vm3 = vweird.f32 %v313_v22 }
 0x120   : > { %vm231_vm5 = vmor %vm229_vm4, %vm230_vm3 }
 0x121   : > { %v225_v24 = vmul.f32 %v313_v22, %v224_v23 }
 0x123   : > { %v226_v25 = vmul.f32 0.5, %v225_v24 }
 0x125   : > { %v227_v26 = vsub.f32 1.5, %v226_v25 }
 0x127   : > { %v228_v27 = vmul.f32 %v313_v22, %v227_v26 }
 0x129   : > { %v232_v29 = vsel %vm231_vm5, %v313_v22, %v228_v27 }
 0x12a   : > { %v234_v30 = vmul.f32 %v233_v28, %v232_v29 }
 0x12c   : > { %v235_v31 = vmax.f32 %v234_v30, 0.0 }
 0x12e   : > { %236 = vst.msk [vmem:[%s168_s25] sm:$0xff] %vm209_vm2, %v235_v31 }
 0x12f PF: > { %s13_s12 = sadd.s32 1, %s320_s12  }
 0x130   : > { %p10_p4 = scmp.ge.s32.totalorder %s13_s12, 4  }
 0x132   :  { %12 = sbr.rel (!%p10_p4) target bundleno = 1 (0x1), region = 62 }

</bundles_post_ra>
